<compile_context>
chip_gen: v7x
topology: tpu7x:2x2x1
jax: 0.10.0
libtpu: 0.0.40
codegen_flags: <defaults>
</compile_context>

<pallas_src>
import functools

import jax
import jax.numpy as jnp
from jax import lax
from jax.experimental import pallas as pl
from jax.experimental.pallas import tpu as pltpu


def _same_pad(size, k, s, d):
    eff_k = (k - 1) * d + 1
    out = (size + s - 1) // s
    pad = max((out - 1) * s + eff_k - size, 0)
    lo = pad // 2
    hi = pad - lo
    return out, lo, hi


def _round_up(x, m):
    return (x + m - 1) // m * m


def _vmem_budget():
    """Per-generation VMEM capacity / scoped-vmem limit / block budget."""
    try:
        cap = int(pltpu.get_tpu_info().vmem_capacity_bytes)
    except Exception:
        cap = None
    if not cap or cap <= 0:
        cap = 64 << 20                     # conservative: v7x per-TensorCore VMEM
    # Leave headroom for Mosaic-internal scratch/semaphores:
    #   v7x   (64 MiB)  -> ~48 MiB limit, ~32 MiB block budget
    #   v5e/v6e (128)   -> ~96 MiB limit, ~64 MiB block budget
    limit = max(32 << 20, min(cap - (16 << 20), (cap * 3) // 4))
    budget = min((limit * 2) // 3, cap // 2)
    return cap, limit, budget


def _sepconv_kernel(x_ref, w_ref, fb_ref, out_ref, *, kh, dilation, th):
    # x_ref:  (hp_ext, Wp*Cin)        whole padded image of one batch (resident)
    # w_ref:  (kh, Wp*Cin, Wo*Cout)   depthwise+pointwise folded banded weights
    # fb_ref: (1, Wo*Cout)            fused bias (f32), lane-tiled over W
    # out_ref:(th, Wo*Cout)           one output H tile, lane-dense
    row0 = pl.multiple_of(pl.program_id(1) * th, 8)

    # kw taps + 1x1 pointwise are folded into kh banded MXU matmuls: every
    # read is a full-lane-width row window (lane offset 0) and the accumulator
    # never round-trips through a VMEM scratch.
    acc = jnp.dot(x_ref[pl.ds(row0, th), :], w_ref[0],
                  preferred_element_type=jnp.float32)
    for i in range(1, kh):
        xi = x_ref[pl.ds(row0 + i * dilation, th), :]
        acc = acc + jnp.dot(xi, w_ref[i], preferred_element_type=jnp.float32)
    out_ref[...] = (acc + fb_ref[...]).astype(out_ref.dtype)


def separable_conv2d(x_nchw, dw_w, dw_b, pw_w, pw_b, *, stride=1, dilation=1):
    n, c_in, h, w = x_nchw.shape
    kh, kw = int(dw_w.shape[2]), int(dw_w.shape[3])
    c_out = int(pw_w.shape[0])
    dtype = x_nchw.dtype
    itemsize = jnp.dtype(dtype).itemsize

    # TF/PyTorch "same" padding, computed for the requested stride.
    ho, pt, pb = _same_pad(h, kh, stride, dilation)
    wo, wl, wr = _same_pad(w, kw, stride, dilation)
    hp = h + pt + pb
    wp = w + wl + wr
    eff_kh = (kh - 1) * dilation + 1
    h_full = hp - eff_kh + 1              # stride-1 "valid" rows over padded input

    lane_in = wp * c_in                   # interleaved (W, C) input lane width
    lane_out = wo * c_out                 # interleaved strided (W, C) output lanes

    # ---- per-generation tile sizing (v7x: 64 MiB VMEM, v5e/v6e: 128 MiB) ----
    cap, vmem_limit, budget = _vmem_budget()
    wgt_bytes = 2 * kh * lane_in * lane_out * 4 + 2 * lane_out * 4
    img_bytes = 2 * (hp + 8 + eff_kh) * lane_in * itemsize     # resident input (x2 over batch)
    per_row = 2 * lane_out * itemsize + 2 * lane_in * itemsize
    avail = budget - wgt_bytes - img_bytes
    if avail < 8 * per_row:
        # TODO(synk): for images/weights too large to keep resident, switch to a
        # manual double-buffered DMA over overlapping row windows
        # (memory_space=pl.ANY + pltpu.make_async_copy) and W-tile the banded
        # pointwise weight (it is translation-invariant along W).
        raise ValueError("working set exceeds the per-core VMEM budget")
    th = min(_round_up(h_full, 8), max(8, (avail // per_row) // 8 * 8))
    nt = pl.cdiv(h_full, th)
    hpad = nt * th
    hp_ext = hpad + eff_kh - 1            # resident rows incl. halo + tile rounding

    # ---- layout: NCHW -> padded NHWC -> (N, H, W*C) interleaved -------------
    # TODO(synk): accept NHWC input / emit NHWC output to drop these wrapper-side
    # HBM passes when the surrounding model is channels-last.
    x_nhwc = jnp.transpose(x_nchw, (0, 2, 3, 1))
    xp = jnp.pad(x_nhwc, ((0, 0), (pt, pb + (hp_ext - hp)), (wl, wr), (0, 0)))
    x_flat = xp.reshape(n, hp_ext, lane_in)

    # ---- fold depthwise taps + 1x1 pointwise into kh banded matrices --------
    # band_i[(ow*stride + j*dil)*Cin + ci, ow*Cout + co] = dw[ci,i,j] * pw[co,ci]
    # The W stride is applied here (only strided output columns are built).
    f32 = jnp.float32
    mm_dtype = dtype if dtype == jnp.bfloat16 else f32   # bf16 feeds the MXU directly on v6e/v7x
    pwm = jnp.transpose(pw_w[:, :, 0, 0], (1, 0)).astype(f32)          # (Cin, Cout)
    wi = jnp.arange(wp)
    owi = jnp.arange(wo)
    bands = []
    for i in range(kh):
        acc = jnp.zeros((wp, c_in, wo, c_out), f32)
        for j in range(kw):
            sel = (wi[:, None] == owi[None, :] * stride + j * dilation)
            blk = dw_w[:, 0, i, j].astype(f32)[:, None] * pwm          # (Cin, Cout)
            acc = acc + sel.astype(f32)[:, None, :, None] * blk[None, :, None, :]
        bands.append(acc.reshape(lane_in, lane_out))
    w_bands = jnp.stack(bands, axis=0).astype(mm_dtype)                # (kh, lane_in, lane_out)
    fb = pw_b.astype(f32) + dw_b.astype(f32) @ pwm                     # fused bias (Cout,)
    fb_tiled = jnp.tile(fb, (wo,)).reshape(1, lane_out)

    kernel = functools.partial(_sepconv_kernel, kh=kh, dilation=dilation, th=th)

    out_flat = pl.pallas_call(
        kernel,
        out_shape=jax.ShapeDtypeStruct((n, hpad, lane_out), dtype),
        grid=(n, nt),
        in_specs=[
            # Whole padded image of one batch, resident across the H-tile axis
            # (index_map constant in t -> no halo duplication, no re-DMA per tile).
            pl.BlockSpec((None, hp_ext, lane_in), lambda b, t: (b, 0, 0)),
            # Constant operands: fetched once (constant index_map).
            # TODO(synk): pipeline_mode=pl.Buffered(1) to single-buffer them once
            # the banded weight is large enough to matter for VMEM.
            pl.BlockSpec((kh, lane_in, lane_out), lambda b, t: (0, 0, 0)),
            pl.BlockSpec((1, lane_out), lambda b, t: (0, 0)),
        ],
        out_specs=pl.BlockSpec((None, th, lane_out), lambda b, t: (b, t, 0)),
        compiler_params=pltpu.CompilerParams(
            dimension_semantics=("parallel", "parallel"),
            vmem_limit_bytes=int(vmem_limit)),
    )(x_flat, w_bands, fb_tiled)

    # ---- un-pad, decimate H by stride, back to NCHW --------------------------
    out = out_flat[:, :h_full]
    if stride > 1:
        # TODO(synk): fold the H decimation into the kernel (strided pl.ds row
        # reads) to also skip computing/writing the decimated rows.
        out = out[:, ::stride]
    out = out.reshape(n, ho, wo, c_out)
    return jnp.transpose(out, (0, 3, 1, 2))


def _reference(x_nchw, dw_w, dw_b, pw_w, pw_b, *, stride=1, dilation=1):
    n, c_in, h, w = x_nchw.shape
    kh, kw = dw_w.shape[2], dw_w.shape[3]
    _, pt, pb = _same_pad(h, kh, stride, dilation)
    _, wl, wr = _same_pad(w, kw, stride, dilation)
    xp = jnp.pad(x_nchw, ((0, 0), (0, 0), (pt, pb), (wl, wr)))
    dn = ("NCHW", "OIHW", "NCHW")
    y = lax.conv_general_dilated(
        xp, dw_w, window_strides=(stride, stride), padding="VALID",
        rhs_dilation=(dilation, dilation), feature_group_count=c_in,
        dimension_numbers=dn)
    y = y + dw_b.reshape(1, c_in, 1, 1)
    z = lax.conv_general_dilated(
        y, pw_w, window_strides=(1, 1), padding="VALID", dimension_numbers=dn)
    return z + pw_b.reshape(1, -1, 1, 1)


if __name__ == "__main__":
    key = jax.random.PRNGKey(0)
    k_x, k_dw, k_db, k_pw, k_pb = jax.random.split(key, 5)

    N, C_IN, C_OUT, H, W, K = 2, 4, 8, 16, 16, 3

    x = jax.random.normal(k_x, (N, C_IN, H, W), jnp.float32)
    dw_weight = jax.random.normal(k_dw, (C_IN, 1, K, K), jnp.float32) * 0.2
    dw_bias = jax.random.normal(k_db, (C_IN,), jnp.float32) * 0.1
    pw_weight = jax.random.normal(k_pw, (C_OUT, C_IN, 1, 1), jnp.float32) * 0.2
    pw_bias = jax.random.normal(k_pb, (C_OUT,), jnp.float32) * 0.1

    for stride, dilation in ((1, 1), (2, 1), (1, 2)):
        out = separable_conv2d(x, dw_weight, dw_bias, pw_weight, pw_bias,
                               stride=stride, dilation=dilation)
        out = jax.block_until_ready(out)
        ref = _reference(x, dw_weight, dw_bias, pw_weight, pw_bias,
                         stride=stride, dilation=dilation)
        assert out.shape == ref.shape, (stride, dilation, out.shape, ref.shape)
        assert jnp.allclose(out, ref, atol=1e-4, rtol=1e-4), \
            f"mismatch vs reference (stride={stride}, dilation={dilation})"

    print("KERNEL_OK")
</pallas_src>

<mosaic_0001>
module attributes {stable_mosaic.version = 11 : i64} {
  func.func @_sepconv_kernel(%arg0: i32, %arg1: i32, %arg2: memref<1x18x72xf32, #tpu.memory_space<vmem>>, %arg3: memref<3x72x128xf32, #tpu.memory_space<vmem>>, %arg4: memref<1x128xf32, #tpu.memory_space<vmem>>, %arg5: memref<1x16x128xf32, #tpu.memory_space<vmem>>) attributes {dimension_semantics = [#tpu.dimension_semantics<parallel>, #tpu.dimension_semantics<parallel>], iteration_bounds = array<i64: 2, 1>, scalar_prefetch = 0 : i64, scratch_operands = 0 : i64, tpu.core_type = #tpu.core_type<tc>, window_params = [{transform_indices = @transform_0, window_bounds = array<i64: 1, 18, 72>}, {pipeline_mode = #tpu.pipeline_mode<synchronous>, transform_indices = @transform_1, window_bounds = array<i64: 3, 72, 128>}, {pipeline_mode = #tpu.pipeline_mode<synchronous>, transform_indices = @transform_2, window_bounds = array<i64: 1, 128>}, {transform_indices = @transform_3, window_bounds = array<i64: 1, 16, 128>}]} {
    %c16_i32 = arith.constant 16 : i32
    %0 = arith.muli %arg1, %c16_i32 : i32
    %1 = tpu.assume_multiple %0, 8 : i32
    %c0 = arith.constant 0 : index
    %2 = arith.index_cast %1 : i32 to index
    %c0_0 = arith.constant 0 : index
    %3 = vector.load %arg2[%c0, %2, %c0_0] : memref<1x18x72xf32, #tpu.memory_space<vmem>>, vector<1x16x72xf32>
    %4 = vector.shape_cast %3 : vector<1x16x72xf32> to vector<16x72xf32>
    %c0_1 = arith.constant 0 : index
    %c0_2 = arith.constant 0 : index
    %c0_3 = arith.constant 0 : index
    %5 = vector.load %arg3[%c0_1, %c0_2, %c0_3] : memref<3x72x128xf32, #tpu.memory_space<vmem>>, vector<1x72x128xf32>
    %6 = vector.shape_cast %5 : vector<1x72x128xf32> to vector<72x128xf32>
    %cst = arith.constant dense<0.000000e+00> : vector<16x128xf32>
    %7 = tpu.matmul %4, %6, %cst {dimension_numbers = #tpu.dot_dimension_numbers<[1], [0], [0], [1], [0, 0, 1, 1], [], []>} : vector<16x72xf32>, vector<72x128xf32>, vector<16x128xf32> -> vector<16x128xf32>
    %c1_i32 = arith.constant 1 : i32
    %8 = arith.addi %1, %c1_i32 : i32
    %c0_4 = arith.constant 0 : index
    %9 = arith.index_cast %8 : i32 to index
    %c0_5 = arith.constant 0 : index
    %10 = vector.load %arg2[%c0_4, %9, %c0_5] : memref<1x18x72xf32, #tpu.memory_space<vmem>>, vector<1x16x72xf32>
    %11 = vector.shape_cast %10 : vector<1x16x72xf32> to vector<16x72xf32>
    %c1 = arith.constant 1 : index
    %c0_6 = arith.constant 0 : index
    %c0_7 = arith.constant 0 : index
    %12 = vector.load %arg3[%c1, %c0_6, %c0_7] : memref<3x72x128xf32, #tpu.memory_space<vmem>>, vector<1x72x128xf32>
    %13 = vector.shape_cast %12 : vector<1x72x128xf32> to vector<72x128xf32>
    %cst_8 = arith.constant dense<0.000000e+00> : vector<16x128xf32>
    %14 = tpu.matmul %11, %13, %cst_8 {dimension_numbers = #tpu.dot_dimension_numbers<[1], [0], [0], [1], [0, 0, 1, 1], [], []>} : vector<16x72xf32>, vector<72x128xf32>, vector<16x128xf32> -> vector<16x128xf32>
    %15 = arith.addf %7, %14 : vector<16x128xf32>
    %c2_i32 = arith.constant 2 : i32
    %16 = arith.addi %1, %c2_i32 : i32
    %c0_9 = arith.constant 0 : index
    %17 = arith.index_cast %16 : i32 to index
    %c0_10 = arith.constant 0 : index
    %18 = vector.load %arg2[%c0_9, %17, %c0_10] : memref<1x18x72xf32, #tpu.memory_space<vmem>>, vector<1x16x72xf32>
    %19 = vector.shape_cast %18 : vector<1x16x72xf32> to vector<16x72xf32>
    %c2 = arith.constant 2 : index
    %c0_11 = arith.constant 0 : index
    %c0_12 = arith.constant 0 : index
    %20 = vector.load %arg3[%c2, %c0_11, %c0_12] : memref<3x72x128xf32, #tpu.memory_space<vmem>>, vector<1x72x128xf32>
    %21 = vector.shape_cast %20 : vector<1x72x128xf32> to vector<72x128xf32>
    %cst_13 = arith.constant dense<0.000000e+00> : vector<16x128xf32>
    %22 = tpu.matmul %19, %21, %cst_13 {dimension_numbers = #tpu.dot_dimension_numbers<[1], [0], [0], [1], [0, 0, 1, 1], [], []>} : vector<16x72xf32>, vector<72x128xf32>, vector<16x128xf32> -> vector<16x128xf32>
    %23 = arith.addf %15, %22 : vector<16x128xf32>
    %c0_14 = arith.constant 0 : index
    %c0_15 = arith.constant 0 : index
    %24 = vector.load %arg4[%c0_14, %c0_15] : memref<1x128xf32, #tpu.memory_space<vmem>>, vector<1x128xf32>
    %25 = vector.broadcast %24 : vector<1x128xf32> to vector<16x128xf32>
    %26 = arith.addf %23, %25 : vector<16x128xf32>
    %c0_16 = arith.constant 0 : index
    %c0_17 = arith.constant 0 : index
    %c0_18 = arith.constant 0 : index
    %27 = vector.load %arg5[%c0_16, %c0_17, %c0_18] : memref<1x16x128xf32, #tpu.memory_space<vmem>>, vector<1x16x128xf32>
    %28 = vector.shape_cast %27 : vector<1x16x128xf32> to vector<16x128xf32>
    %29 = vector.shape_cast %26 : vector<16x128xf32> to vector<1x16x128xf32>
    tpu.vector_store %arg5[%c0_16, %c0_17, %c0_18], %29 {strides = array<i32>} : memref<1x16x128xf32, #tpu.memory_space<vmem>>, vector<1x16x128xf32>,
    return
  }
  func.func @transform_0(%arg0: i32, %arg1: i32) -> (i32, i32, i32) {
    %c0_i32 = arith.constant 0 : i32
    %c0_i32_0 = arith.constant 0 : i32
    %c0_i32_1 = arith.constant 0 : i32
    return %arg0, %c0_i32, %c0_i32_0 : i32, i32, i32
  }
  func.func @transform_1(%arg0: i32, %arg1: i32) -> (i32, i32, i32) {
    %c0_i32 = arith.constant 0 : i32
    %c0_i32_0 = arith.constant 0 : i32
    %c0_i32_1 = arith.constant 0 : i32
    %c0_i32_2 = arith.constant 0 : i32
    return %c0_i32, %c0_i32_0, %c0_i32_1 : i32, i32, i32
  }
  func.func @transform_2(%arg0: i32, %arg1: i32) -> (i32, i32) {
    %c0_i32 = arith.constant 0 : i32
    %c0_i32_0 = arith.constant 0 : i32
    %c0_i32_1 = arith.constant 0 : i32
    return %c0_i32, %c0_i32_0 : i32, i32
  }
  func.func @transform_3(%arg0: i32, %arg1: i32) -> (i32, i32, i32) {
    %c0_i32 = arith.constant 0 : i32
    %c0_i32_0 = arith.constant 0 : i32
    return %arg0, %arg1, %c0_i32 : i32, i32, i32
  }
}

</mosaic_0001>

<bundles_post_ra>
// kernel: tpu_custom_call.1
= control target key start
LH: loop header
LB: loop body
LE: loop exit
PB: predicated region body
PF: predicated region fallthrough
CT: control target
= control target key end

     0   :  { %8 = vsyncpa [#allocation3], 0  ;;  %s1159_s0 = inlined_call_operand.vmem [shape: f32[2,18,72], index: 0, kind: input, shape index: {}]   ;;  %s1160_s1 = inlined_call_operand.hbm [shape: f32[3,72,128], index: 1, kind: input, shape index: {}]   ;;  %s1161_s2 = inlined_call_operand.vmem [shape: f32[1,128], index: 2, kind: input, shape index: {}]   ;;  %s1162_s3 = inlined_call_operand.hbm [shape: f32[2,16,128], index: 3, kind: output, shape index: {}]  }
   0x1   :  { %9 = vsyncpa [#allocation4], 0 }
   0x2   :  { %11 = vsyncpa [#allocation4 + $0x1], 0  ;;  %s989_s12 = smov 0   ;;  %s991_s13 = smov 0  }
   0x3   :  { %s993_s14 = smov 0   ;;  %s995_s15 = smov 0  }
   0x4   :  { %s997_s16 = smov 0   ;;  %s999_s17 = smov 0  }
   0x5 LB: > { %s606_s18 = sadd.s32 4294967295, %s961_s17   ;;  %s607_s19 = sadd.s32 4294967294, %s961_s17   ;;  %s961_s17 = sphi %s999_s17, %s17_s17   ;;  %s957_s16 = sphi %s997_s16, %s1180_s16   ;;  %s953_s15 = sphi %s995_s15, %s1179_s15   ;;  %s949_s14 = sphi %s993_s14, %s1178_s14   ;;  %s945_s13 = sphi %s991_s13, %s1177_s13   ;;  %s941_s12 = sphi %s989_s12, %s1176_s12  }
   0x6   : > { %s29_s20 = sadd.s32 1, %s957_s16  ;;  %s106_s21 = sadd.s32 1, %s949_s14 }
   0x7   : > { %p31_p0 = scmp.ge.s32.totalorder %s29_s20, 2  ;;  %p116_p1 = scmp.ne.s32.totalorder %s949_s14, %s945_s13 }
   0x8   : > { %p117_p2 = scmp.eq.s32.totalorder %s606_s18, 1  ;;  %p122_p3 = scmp.ne.s32.totalorder %s945_s13, %s941_s12 }
   0x9   : > { %s1182_s20 = smov (%p31_p0, %s29_s20), 0  ;;  %p123_p5 = scmp.eq.s32.totalorder %s607_s19, 1 }
   0xa   : > { %p1029_p4 = por %p117_p2, %p116_p1  ;;  %s101_s23 = ssub.s32 %s957_s16, %s1182_s20 }
   0xb   : > { %p608_p6 = scmp.ge.s32.totalorder %s961_s17, 1  ;;  %p104_p7 = scmp.eq.s32.totalorder %s101_s23, 0 }
   0xc   : > { %s1167_s22 = scalar_select %p1029_p4, 1, 0 }
   0xd   : > { %p1036_p8 = por %p123_p5, %p122_p3  ;;  %p130_p9 = scmp.lt.s32.totalorder %s961_s17, 3 }
   0xe   : > { %s1042_s25 = scalar_select %p104_p7, %s949_s14, %s106_s21  }
   0xf   : > { %s1168_s24 = scalar_select %p1036_p8, 1, 0 }
  0x10   : > { %p1044_p10 = pnand %p608_p6, %p130_p9  ;;  %p1048_p11 = scmp.eq.s32.totalorder %s606_s18, 0 }
  0x11   : > { %s963_s28 = smov [#allocation2]   ;;  %s851_s6 = scalar_lea.hbm %s1160_s1, 3456 }
  0x12   : > { %s1169_s26 = scalar_select %p1044_p10, 1, 0 }
  0x13   : > { %s1170_s27 = scalar_select %p1048_p11, 1, 0 }
  0x14   : > { %p787_p12 = pneg %p1044_p10  ;;  %s142_s29 = sshll.u32 %s963_s28, 4  ;;  %s143_s29 = int_to_ptr.vmem [resolvable:$true] %s142_s29 }
  0x15   : > { %p852_p0 = scmp.ne.s32.totalorder %s1160_s1, %s851_s6  ;;  %p858_p5 = scmp.lt.u32.totalorder %s851_s6, %s1160_s1 }
  0x16   : > { %p1056_p13 = pnand %p1048_p11, %p787_p12 }
  0x18   : > { %p853_p1 = pneg %p1056_p13 }
  0x1a   : > { %p854_p2 = pnand %p853_p1, %p852_p0 }
  0x1c   : > { %p855_p3 = pneg %p854_p2 }
  0x1e   : > { %p860_p6 = pnand %p858_p5, %p855_p3 }
  0x20   : > { %863 = shalt.err (!%p860_p6)
}
  0x21   : > { %s864_s11 = scalar_lea.vmem %s143_s29, 3456  ;;  %p872_p8 = scmp.lt.s32.totalorder %s143_s29, %s143_s29 }
  0x22   : > { %p865_p7 = scmp.ne.s32.totalorder %s143_s29, %s864_s11  ;;  %p873_p4 = scmp.lt.s32.totalorder %s864_s11, %s864_s11 }
  0x24   : > { %p867_p9 = pnand %p865_p7, %p853_p1  ;;  %p874_p11 = por %p873_p4, %p872_p8 }
  0x26   : > { %p868_p12 = pneg %p867_p9 }
  0x28   : > { %p875_p10 = pnand %p874_p11, %p868_p12 }
  0x2a   : > { %878 = shalt.err (!%p875_p10)
}
  0x2b   : > { %s964_s18 = smov 128   ;;  %s965_s19 = smov 8  }
  0x2c   : > { %790 = dma.hbm_to_vmem [thread:$0]  (!%p1056_p13), %s1160_s1, 3456, %s143_s29, [#allocation3], %s964_s18, %s964_s18, %s965_s19  }
  0x2d   : > { %p1172_p0 = scmp.ne.s32.totalorder %s1169_s26, 0 }
  0x2e   : > { %p1173_p2 = scmp.ne.s32.totalorder (!%p1172_p0), %s1170_s27, 0 }
  0x2f   : > { %169 = sbr.rel (%p1172_p0) target bundleno = 326 (0x146), region = 32 }
  0x36   : > { %932 = dma.done.wait (%p1173_p2), [#allocation3], 3456  }
  0x37   : > { %934 = vsyncadd (%p1173_p2), [#allocation3], 4294963840  ;;  %p193_p4 = scmp.lt.s32.totalorder %s953_s15, 1  ;;  %v203_v0 = vld [vmem:[#allocation2] sm:$0xff]  ;;  %v204_v1 = vld [vmem:[#allocation2 + $0x8] sm:$0xff]  ;;  %vm226_vm0 = vcmask 588800  }
  0x38   : > { %v205_v2 = vld [vmem:[#allocation2 + $0x10] sm:$0xff]  ;;  %v744_v3 = vpack.c.bf16 %v204_v1, %v203_v0  ;;  %v206_v4 = vld [vmem:[#allocation2 + $0x18] sm:$0xff]  ;;  %v207_v6 = vld [vmem:[#allocation2 + $0x20] sm:$0xff]  ;;  %s190_s26 = sand.u32 1, %s945_s13   ;;  %s631_s10 = sshll.u32 %s953_s15, 8 }
  0x39   : > { %s194_s28 = scalar_select %p193_p4, %s953_s15, 1  ;;  %v748_v5 = vpack.c.bf16 %v206_v4, %v205_v2  ;;  %v208_v7 = vld [vmem:[#allocation2 + $0x28] sm:$0xff]  ;;  %v218_v9 = vld [vmem:[#allocation2 + $0x50] sm:$0xff]  ;;  %v219_v14 = vld [vmem:[#allocation2 + $0x58] sm:$0xff] }
  0x3a   : > { %745 = vmatprep.subr.bf16.mxu0 %v744_v3  ;;  %v217_v8 = vld [vmem:[#allocation2 + $0x48] sm:$0xff]  ;;  %v752_v12 = vpack.c.bf16 %v208_v7, %v207_v6  ;;  %v209_v13 = vld [vmem:[#allocation2 + $0x30] sm:$0xff]  ;;  %v220_v15 = vld [vmem:[#allocation2 + $0x60] sm:$0xff]  ;;  %s613_s27 = sshll.u32 %s190_s26, 4  ;;  %s1111_s19 = scalar_lea.hbm %s1162_s3, %s631_s10 }
  0x3b   : > { %s780_s4 = smul.u32 24, %s194_s28  ;;  %747 = vmatpush3.bf16.msra.mxu0 %v744_v3  ;;  %v728_v11 = vpack.c.bf16 %v218_v9, %v217_v8  ;;  %v210_v16 = vld [vmem:[#allocation2 + $0x38] sm:$0xff]  ;;  %v732_v17 = vpack.c.bf16 %v220_v15, %v219_v14  ;;  %v221_v18 = vld [vmem:[#allocation2 + $0x68] sm:$0xff]  ;;  %v222_v19 = vld [vmem:[#allocation2 + $0x70] sm:$0xff]  ;;  %s192_s8 = scalar_lea.vmem [#allocation5], %s613_s27 }
  0x3c   : > { %749 = vmatprep.subr.bf16.mxu0 %v748_v5  ;;  %v736_v20 = vpack.c.bf16 %v222_v19, %v221_v18  ;;  %v756_v21 = vpack.c.bf16 %v210_v16, %v209_v13  ;;  %v223_v22 = vld [vmem:[#allocation2 + $0x78] sm:$0xff]  ;;  %v224_v23 = vld [vmem:[#allocation2 + $0x80] sm:$0xff]  ;;  %v394_v27 = vld [vmem:[#allocation2 + $0x90] sm:$0xff]  ;;  %s513_s9 = sshll.u32 %s192_s8, 4  ;;  %s1113_s21 = scalar_lea.sflag [#allocation4], %s190_s26  ;;  %s1106_s9 = int_to_ptr.vmem [resolvable:$true] %s513_s9 }
  0x3d   : > { %s1087_s29 = scalar_lea.vmem %s1159_s0, %s780_s4  ;;  %729 = vmatprep.subr.bf16.mxu1 %v728_v11  ;;  %v740_v25 = vpack.c.bf16 %v224_v23, %v223_v22  ;;  %v211_v26 = vld [vmem:[#allocation2 + $0x40] sm:$0xff]  ;;  %v395_v28 = vld [vmem:[#allocation2 + $0x98] sm:$0xff]  ;;  %v397_v30 = vld [vmem:[#allocation2 + $0xa8] sm:$0xff]  ;;  %s879_s15 = scalar_lea.vmem %s1106_s9, 256 }
  0x3e   : > { %v201_v10 = vld [vmem:[%s1087_s29] sm:$0xff]  ;;  %731 = vmatpush3.bf16.msra.mxu1 %v728_v11  ;;  %v396_v29 = vld [vmem:[#allocation2 + $0xa0] sm:$0xff]  ;;  %v760_v31 = vpack.c.bf16 %v395_v28, %v394_v27  ;;  %v225_v32 = vld [vmem:[#allocation2 + $0x88] sm:$0xff]  ;;  %p880_p8 = scmp.ne.s32.totalorder %s1106_s9, %s879_s15  ;;  %p1174_p10 = scmp.ne.s32.totalorder %s1167_s22, 0 }
  0x3f   : > { %704 = vmatprep.mubr.msk.f32.mxu0 %vm226_vm0, %v201_v10  ;;  %751 = vmatpush3.bf16.msra.mxu0 %v748_v5  ;;  %v615_v24 = vld [vmem:[%s1087_s29 + $0x1] sm:$0xff]  ;;  %v764_v34 = vpack.c.bf16 %v397_v30, %v396_v29  ;;  %v616_v38 = vld [vmem:[%s1087_s29 + $0x9] sm:$0xff]  ;;  %v401_v41 = vld [vmem:[#allocation2 + $0xc8] sm:$0xff]  ;;  %s966_s23 = smov [#allocation5]  }
  0x40   : > { %733 = vmatprep.subr.bf16.mxu1 %v732_v17  ;;  %753 = vmatprep.subr.bf16.mxu0 %v752_v12  ;;  %v202_v33 = vld [vmem:[%s1087_s29 + $0x8] sm:$0xff]  ;;  %v398_v36 = vld [vmem:[#allocation2 + $0xb0] sm:$0xff]  ;;  %v400_v40 = vld [vmem:[#allocation2 + $0xc0] sm:$0xff]  ;;  %p881_p11 = pnand %p880_p8, %p1174_p10  ;;  %s883_s28 = sshll.u32 %s966_s23, 4  ;;  %s884_s28 = int_to_ptr.vmem [resolvable:$false] %s883_s28 }
  0x41   : > { %683 = vmatprep.mubr.msk.f32.mxu1 %vm226_vm0, %v615_v24  ;;  %v621_v35 = vld [vmem:[%s1087_s29 + $0x2] sm:$0xff]  ;;  %v772_v42 = vpack.c.bf16 %v401_v41, %v400_v40  ;;  %v622_v44 = vld [vmem:[%s1087_s29 + $0xa] sm:$0xff]  ;;  %v625_v48 = vld [vmem:[%s1161_s2] ss:$0 sm:$0xff]  ;;  %s885_s4 = scalar_lea.vmem %s884_s28, 512  ;;  %p886_p1 = scmp.lt.s32.totalorder %s1106_s9, %s884_s28 }
  0x42   : > { %735 = vmatpush3.bf16.msra.mxu1 %v732_v17  ;;  %v399_v37 = vld [vmem:[#allocation2 + $0xb8] sm:$0xff]  ;;  %v402_v43 = vld [vmem:[#allocation2 + $0xd0] sm:$0xff]  ;;  %p882_p13 = pneg %p881_p11  ;;  %p887_p3 = scmp.lt.s32.totalorder %s885_s4, %s879_s15 }
  0x43   : > { %755 = vmatpush3.bf16.msra.mxu0 %v752_v12  ;;  %737 = vmatprep.subr.bf16.mxu1 %v736_v20  ;;  %v768_v39 = vpack.c.bf16 %v399_v37, %v398_v36 }
  0x44   : > { %757 = vmatprep.subr.bf16.mxu0 %v756_v21  ;;  %p888_p5 = por %p887_p3, %p886_p1 }
  0x46   : > { %739 = vmatpush3.bf16.msra.mxu1 %v736_v20  ;;  %p889_p6 = pnand %p888_p5, %p882_p13 }
  0x47   : > { %759 = vmatpush3.bf16.msra.mxu0 %v756_v21  ;;  %741 = vmatprep.subr.bf16.mxu1 %v740_v25 }
  0x48   : > { %702 = vmatprep.subr.mxu0 %v211_v26 }
  0x4a   : > { %743 = vmatpush3.bf16.msra.mxu1 %v740_v25 }
  0x4b   : > { %703 = vmatpush3.msra.mxu0 %v211_v26  ;;  %681 = vmatprep.subr.mxu1 %v225_v32 }
  0x4c   : > { %761 = vmatprep.subr.bf16.mxu0 %v760_v31  ;;  %705 = vmatmul.mubr.msk.f32.vlgmr.msra.gmra.mrb[0].mxu0 %vm226_vm0, %v202_v33 }
  0x4d   : > { %763 = vmatpush3.bf16.msra.mxu0 %v760_v31  ;;  %725 = vmatprep.mubr.msk.f32.mxu0 %vm226_vm0, %v621_v35 }
  0x4e   : > { %765 = vmatprep.subr.bf16.mxu0 %v764_v34  ;;  %682 = vmatpush3.msra.mxu1 %v225_v32 }
  0x4f   : > { %684 = vmatmul.mubr.msk.f32.vlgmr.msra.gmra.mrb[0].mxu1 %vm226_vm0, %v616_v38 }
  0x51   : > { %767 = vmatpush3.bf16.msra.mxu0 %v764_v34 }
  0x52   : > { %769 = vmatprep.subr.bf16.mxu0 %v768_v39 }
  0x55   : > { %771 = vmatpush3.bf16.msra.mxu0 %v768_v39 }
  0x56   : > { %773 = vmatprep.subr.bf16.mxu0 %v772_v42 }
  0x59   : > { %775 = vmatpush3.bf16.msra.mxu0 %v772_v42 }
  0x5a   : > { %723 = vmatprep.subr.mxu0 %v402_v43 }
  0x5d   : > { %724 = vmatpush3.msra.mxu0 %v402_v43 }
  0x5e   : > { %726 = vmatmul.mubr.msk.f32.vlgmr.msra.gmra.mrb[0].mxu0 %vm226_vm0, %v622_v44 }
 0x122   : > { %v685_v45 = vpop.f32.mrb[0].mxu1 }
 0x123   : > { %v299_v46 = vpop.f32.mrb[1].mxu1 }
 0x131   : > { %v727_v47 = vpop.f32.mrb[0].mxu0 }
 0x132   : > { %v776_v49 = vadd.f32 %v727_v47, %v685_v45  ;;  %v475_v50 = vpop.f32.mrb[1].mxu0 }
 0x133   : > { %v777_v51 = vadd.f32 %v475_v50, %v299_v46 }
 0x134   : > { %v494_v52 = vadd.f32 %v776_v49, %v625_v48 }
 0x135   : > { %v493_v53 = vadd.f32 %v777_v51, %v625_v48 }
 0x136   : > { %496 = vst [vmem:[%s192_s8 + $0x8] sm:$0xff] %v494_v52 }
 0x137   : > { %495 = vst [vmem:[%s192_s8] sm:$0xff] %v493_v53 }
 0x138   : > { %892 = shalt.err (!%p889_p6)
}
 0x139   : > { %s893_s30 = scalar_lea.hbm %s1111_s19, 256  ;;  %s897_s26 = scalar_lea.hbm %s1162_s3, 512 }
 0x13a   : > { %p894_p7 = scmp.ne.s32.totalorder %s1111_s19, %s893_s30  ;;  %p898_p0 = scmp.lt.u32.totalorder %s1111_s19, %s1162_s3 }
 0x13b   : > { %p899_p2 = scmp.lt.u32.totalorder %s897_s26, %s893_s30  ;;  %p901_p8 = scmp.lt.u32.totalorder %s893_s30, %s1111_s19 }
 0x13c   : > { %p895_p9 = pnand %p894_p7, %p1174_p10 }
 0x13d   : > { %p900_p4 = por %p899_p2, %p898_p0 }
 0x13e   : > { %p896_p12 = pneg %p895_p9 }
 0x13f   : > { %p902_p11 = por %p901_p8, %p900_p4 }
 0x141   : > { %p903_p13 = pnand %p902_p11, %p896_p12 }
 0x143   : > { %906 = shalt.err (!%p903_p13)
}
 0x144   : > { %s967_s7 = smov 128   ;;  %s968_s8 = smov 8  }
 0x145   : > { %785 = dma.vmem_to_hbm [thread:$0]  (%p1174_p10), %s1106_s9, 256, %s1111_s19, %s1113_s21, %s967_s7, %s967_s7, %s968_s8  }
 0x146 PF: > { %p797_p1 = scmp.ge.s32.totalorder %s961_s17, 2  ;;  %s528_s10 = sand.u32 1, %s941_s12  }
 0x147   : > { %p1175_p3 = scmp.ne.s32.totalorder %s1168_s24, 0  ;;  %s529_s11 = scalar_lea.sflag [#allocation4], %s528_s10 }
 0x149   : > { %p792_p5 = pnand %p797_p1, %p1175_p3 }
 0x14b   : > { %936 = dma.done.wait (!%p792_p5), %s529_s11, 256  }
 0x14c   : > { %938 = vsyncadd (!%p792_p5), %s529_s11, 4294967040  ;;  %s17_s17 = sadd.s32 1, %s961_s17   ;;  %s1176_s12 = smov %s945_s13 }
 0x14d   : > { %p14_p6 = scmp.ge.s32.totalorder %s17_s17, 4   ;;  %s1177_s13 = smov %s949_s14 }
 0x14e   : > { %s1178_s14 = smov %s1042_s25  ;;  %s1179_s15 = smov %s957_s16 }
 0x14f   : > { %s1180_s16 = smov %s1182_s20  ;;  %16 = sbr.rel (!%p14_p6) target bundleno = 5 (0x5), region = 77 }
 0x156   :  { %534 = vsyncpa [#allocation3], 1 }
 0x157   :  { %536 = vsyncpa [#allocation3 + $0x1], 1 }
 0x158   :  { %537 = vsyncpa [#allocation4], 1 }
 0x159   :  { %539 = vsyncpa [#allocation4 + $0x1], 1 }

</bundles_post_ra>
